<compile_context>
chip_gen: v6e
topology: v6e:2x2x1
jax: 0.10.0
libtpu: 0.0.40
codegen_flags: <defaults>
</compile_context>

<pallas_src>
import functools

import jax
import jax.numpy as jnp
from jax import lax
from jax.experimental import pallas as pl
from jax.experimental.pallas import tpu as pltpu


def _round_up(x, m):
    return ((x + m - 1) // m) * m


def equiv_set_conv_kernel(gv_ref, ge_ref, x_ref, x0_ref,
                          w1t_ref, b1_ref,
                          w2at_ref, w2bt_ref, b2_ref,
                          wt_ref, bw_ref,
                          out_ref, xe_acc, xv_acc, *, alpha):
    f32 = jnp.float32
    bf16 = jnp.bfloat16

    p = pl.program_id(0)                      # phase: 0 = build Xe, 1 = build Xv
    i = pl.program_id(1)                      # E-tile index
    last_i = pl.num_programs(1) - 1

    Gv = gv_ref[...]                          # [tE, N]  one-hot rows of `vertex` (bf16)
    Ge = ge_ref[...]                          # [tE, M]  one-hot rows of `edges`  (bf16)

    # Xgather = X[vertex] for this E tile (needed in both phases).
    # Gv is exact one-hot, so this is a lossless row gather of the bf16 X.
    Xg = jnp.dot(Gv, x_ref[...], preferred_element_type=f32)          # [tE, Fin_p]

    @pl.when(p == 0)
    def _phase0():
        @pl.when(i == 0)
        def _init():
            xe_acc[...] = jnp.zeros_like(xe_acc)
            xv_acc[...] = jnp.zeros_like(xv_acc)

        # Xve = W1(X)[vertex] == (Gv @ X) @ W1^T + b1   (one-hot commutes with Linear)
        Xve = (jnp.dot(Xg.astype(bf16), w1t_ref[...],
                       preferred_element_type=f32) + b1_ref[...])      # [tE, Fout_p]
        # Xe += scatter_add(Xve, edges)  ->  Ge^T @ Xve (contract over E tile)
        xe_acc[...] += lax.dot_general(Ge, Xve.astype(bf16),
                                       (((0,), (0,)), ((), ())),
                                       preferred_element_type=f32)     # [M, Fout_p]

    @pl.when(p == 1)
    def _phase1():
        # Xev = Xe[edges]
        Xev = jnp.dot(Ge, xe_acc[...].astype(bf16),
                      preferred_element_type=f32)                      # [tE, Fout_p]
        # W2(cat([X[vertex], Xev], -1)) == Xg @ W2a^T + Xev @ W2b^T + b2
        Xev2 = (jnp.dot(Xg.astype(bf16), w2at_ref[...], preferred_element_type=f32)
                + jnp.dot(Xev.astype(bf16), w2bt_ref[...], preferred_element_type=f32)
                + b2_ref[...])                                         # [tE, Fout_p]
        # Xv += scatter_add(Xev2, vertex, dim_size=N)  ->  Gv^T @ Xev2
        xv_acc[...] += lax.dot_general(Gv, Xev2.astype(bf16),
                                       (((0,), (0,)), ((), ())),
                                       preferred_element_type=f32)     # [N, Fout_p]

        @pl.when(i == last_i)
        def _finalize():
            # residual mix + final MLP W (single Linear)
            Xmix = (1.0 - alpha) * xv_acc[...] + alpha * x0_ref[...]
            out_ref[...] = (jnp.dot(Xmix.astype(bf16), wt_ref[...],
                                    preferred_element_type=f32)
                            + bw_ref[...]).astype(out_ref.dtype)


def equiv_set_conv(X, vertex, edges, X0, params, *, num_edges, alpha=0.5, tile_e=256):
    """X: [N, Fin], vertex/edges: [E] int32 incidence lists, X0: [N, Fout].

    `num_edges` (number of hyperedges M) is a static Python int — no host sync.
    The wrapper is jax.jit-compatible.
    """
    N, Fin = X.shape
    Fout = params["W1"].shape[0]
    E = int(vertex.shape[0])
    M = int(num_edges)
    bf16 = jnp.bfloat16
    f32 = jnp.float32

    # Padded sizes: features lane-dense (x128), rows sublane-aligned (x8).
    Fin_p = _round_up(Fin, 128)
    Fout_p = _round_up(Fout, 128)
    N_p = _round_up(N, 8)
    M_p = _round_up(M, 8)
    tE = _round_up(min(tile_e, E), 8)
    E_p = _round_up(E, tE)
    n_e_tiles = E_p // tE

    # One-hot incidence matrices in bf16 (0/1 exact).  Padded E rows use index
    # -1 -> all-zero rows, which contribute nothing to gathers or scatter-adds.
    v_idx = jnp.full((E_p,), -1, jnp.int32).at[:E].set(vertex.astype(jnp.int32))
    e_idx = jnp.full((E_p,), -1, jnp.int32).at[:E].set(edges.astype(jnp.int32))
    Gv = jax.nn.one_hot(v_idx, N_p, dtype=bf16)          # [E_p, N_p]
    Ge = jax.nn.one_hot(e_idx, M_p, dtype=bf16)          # [E_p, M_p]

    # Zero-padded operands (padded feature columns stay exactly zero through
    # the whole pipeline, so slicing the output back is exact).
    Xp = jnp.zeros((N_p, Fin_p), bf16).at[:N, :Fin].set(X.astype(bf16))
    X0p = jnp.zeros((N_p, Fout_p), f32).at[:N, :Fout].set(X0.astype(f32))

    # Split W2 (acting on cat([X, Xev])) into the Fin part and the Fout part so
    # no concat is needed inside the kernel.
    W2 = params["W2"]
    W2a, W2b = W2[:, :Fin], W2[:, Fin:Fin + Fout]

    W1t = jnp.zeros((Fin_p, Fout_p), bf16).at[:Fin, :Fout].set(params["W1"].T.astype(bf16))
    W2at = jnp.zeros((Fin_p, Fout_p), bf16).at[:Fin, :Fout].set(W2a.T.astype(bf16))
    W2bt = jnp.zeros((Fout_p, Fout_p), bf16).at[:Fout, :Fout].set(W2b.T.astype(bf16))
    Wt = jnp.zeros((Fout_p, Fout_p), bf16).at[:Fout, :Fout].set(params["W"].T.astype(bf16))
    b1 = jnp.zeros((1, Fout_p), f32).at[0, :Fout].set(params["b1"].astype(f32))
    b2 = jnp.zeros((1, Fout_p), f32).at[0, :Fout].set(params["b2"].astype(f32))
    bW = jnp.zeros((1, Fout_p), f32).at[0, :Fout].set(params["bW"].astype(f32))

    full = lambda shape: pl.BlockSpec(shape, lambda p, i: (0, 0))
    etile = lambda cols: pl.BlockSpec((tE, cols), lambda p, i: (i, 0))

    kernel = functools.partial(equiv_set_conv_kernel, alpha=float(alpha))
    out_p = pl.pallas_call(
        kernel,
        out_shape=jax.ShapeDtypeStruct((N_p, Fout_p), f32),
        grid=(2, n_e_tiles),
        in_specs=[
            etile(N_p),                 # Gv
            etile(M_p),                 # Ge
            full((N_p, Fin_p)),         # X
            full((N_p, Fout_p)),        # X0
            full((Fin_p, Fout_p)),      # W1^T
            full((1, Fout_p)),          # b1
            full((Fin_p, Fout_p)),      # W2a^T
            full((Fout_p, Fout_p)),     # W2b^T
            full((1, Fout_p)),          # b2
            full((Fout_p, Fout_p)),     # W^T
            full((1, Fout_p)),          # bW
        ],
        out_specs=full((N_p, Fout_p)),
        scratch_shapes=[
            pltpu.VMEM((M_p, Fout_p), f32),   # Xe accumulator
            pltpu.VMEM((N_p, Fout_p), f32),   # Xv accumulator
        ],
        compiler_params=pltpu.CompilerParams(
            dimension_semantics=("arbitrary", "arbitrary"),
            vmem_limit_bytes=48 * 1024 * 1024,
        ),
    )(Gv, Ge, Xp, X0p, W1t, b1, W2at, W2bt, b2, Wt, bW)

    return out_p[:N, :Fout]


def equiv_set_conv_reference(X, vertex, edges, X0, params, *, num_edges, alpha=0.5):
    """Plain-JAX f32 replica of the PyTorch forward (for validation)."""
    N = X.shape[0]
    H1 = X @ params["W1"].T + params["b1"]
    Xve = H1[vertex]
    Xe = jax.ops.segment_sum(Xve, edges, num_segments=num_edges)
    Xev = Xe[edges]
    Xcat = jnp.concatenate([X[vertex], Xev], axis=-1)
    Xev2 = Xcat @ params["W2"].T + params["b2"]
    Xv = jax.ops.segment_sum(Xev2, vertex, num_segments=N)
    Xm = (1.0 - alpha) * Xv + alpha * X0
    return Xm @ params["W"].T + params["bW"]


def init_params(key, in_features, out_features):
    ks = jax.random.split(key, 6)
    s = 0.1
    return {
        "W1": s * jax.random.normal(ks[0], (out_features, in_features), jnp.float32),
        "b1": s * jax.random.normal(ks[1], (out_features,), jnp.float32),
        "W2": s * jax.random.normal(ks[2], (out_features, in_features + out_features), jnp.float32),
        "b2": s * jax.random.normal(ks[3], (out_features,), jnp.float32),
        "W":  s * jax.random.normal(ks[4], (out_features, out_features), jnp.float32),
        "bW": s * jax.random.normal(ks[5], (out_features,), jnp.float32),
    }


if __name__ == "__main__":
    key = jax.random.PRNGKey(0)
    k_x, k_x0, k_v, k_p = jax.random.split(key, 4)

    N, Fin, Fout = 32, 32, 32     # nodes, in_features, out_features
    E, M = 64, 16                 # incidence-list length, number of hyperedges
    alpha = 0.5

    X = jax.random.normal(k_x, (N, Fin), jnp.float32)
    X0 = jax.random.normal(k_x0, (N, Fout), jnp.float32)
    vertex = jax.random.randint(k_v, (E,), 0, N, jnp.int32)
    edges = (jnp.arange(E, dtype=jnp.int32) % M)          # every edge id present
    params = init_params(k_p, Fin, Fout)

    # M is static; tile_e=32 exercises multi-tile accumulation over E.
    fwd = jax.jit(functools.partial(equiv_set_conv, num_edges=M, alpha=alpha, tile_e=32))
    out = jax.block_until_ready(fwd(X, vertex, edges, X0, params))

    ref = equiv_set_conv_reference(X, vertex, edges, X0, params, num_edges=M, alpha=alpha)
    assert out.shape == (N, Fout)
    # bf16 MXU operands with f32 accumulation -> loosened tolerance vs f32 ref.
    assert jnp.allclose(out, ref, rtol=5e-2, atol=5e-2), "mismatch vs reference"

    print("KERNEL_OK")
</pallas_src>

<mosaic_0001>
module attributes {stable_mosaic.version = 11 : i64} {
  func.func @equiv_set_conv_kernel(%arg0: i32, %arg1: i32, %arg2: memref<32x32xbf16, #tpu.memory_space<vmem>>, %arg3: memref<32x16xbf16, #tpu.memory_space<vmem>>, %arg4: memref<32x128xbf16, #tpu.memory_space<vmem>>, %arg5: memref<32x128xf32, #tpu.memory_space<vmem>>, %arg6: memref<128x128xbf16, #tpu.memory_space<vmem>>, %arg7: memref<1x128xf32, #tpu.memory_space<vmem>>, %arg8: memref<128x128xbf16, #tpu.memory_space<vmem>>, %arg9: memref<128x128xbf16, #tpu.memory_space<vmem>>, %arg10: memref<1x128xf32, #tpu.memory_space<vmem>>, %arg11: memref<128x128xbf16, #tpu.memory_space<vmem>>, %arg12: memref<1x128xf32, #tpu.memory_space<vmem>>, %arg13: memref<32x128xf32, #tpu.memory_space<vmem>>, %arg14: memref<16x128xf32, #tpu.memory_space<vmem>>, %arg15: memref<32x128xf32, #tpu.memory_space<vmem>>) attributes {dimension_semantics = [#tpu.dimension_semantics<arbitrary>, #tpu.dimension_semantics<arbitrary>], iteration_bounds = array<i64: 2, 2>, scalar_prefetch = 0 : i64, scratch_operands = 2 : i64, tpu.core_type = #tpu.core_type<tc>, window_params = [{transform_indices = @transform_0, window_bounds = array<i64: 32, 32>}, {transform_indices = @transform_1, window_bounds = array<i64: 32, 16>}, {pipeline_mode = #tpu.pipeline_mode<synchronous>, transform_indices = @transform_2, window_bounds = array<i64: 32, 128>}, {pipeline_mode = #tpu.pipeline_mode<synchronous>, transform_indices = @transform_3, window_bounds = array<i64: 32, 128>}, {pipeline_mode = #tpu.pipeline_mode<synchronous>, transform_indices = @transform_4, window_bounds = array<i64: 128, 128>}, {pipeline_mode = #tpu.pipeline_mode<synchronous>, transform_indices = @transform_5, window_bounds = array<i64: 1, 128>}, {pipeline_mode = #tpu.pipeline_mode<synchronous>, transform_indices = @transform_6, window_bounds = array<i64: 128, 128>}, {pipeline_mode = #tpu.pipeline_mode<synchronous>, transform_indices = @transform_7, window_bounds = array<i64: 128, 128>}, {pipeline_mode = #tpu.pipeline_mode<synchronous>, transform_indices = @transform_8, window_bounds = array<i64: 1, 128>}, {pipeline_mode = #tpu.pipeline_mode<synchronous>, transform_indices = @transform_9, window_bounds = array<i64: 128, 128>}, {pipeline_mode = #tpu.pipeline_mode<synchronous>, transform_indices = @transform_10, window_bounds = array<i64: 1, 128>}, {pipeline_mode = #tpu.pipeline_mode<synchronous>, transform_indices = @transform_11, window_bounds = array<i64: 32, 128>}]} {
    %c0 = arith.constant 0 : index
    %c0_0 = arith.constant 0 : index
    %0 = vector.load %arg2[%c0, %c0_0] : memref<32x32xbf16, #tpu.memory_space<vmem>>, vector<32x32xbf16>
    %c0_1 = arith.constant 0 : index
    %c0_2 = arith.constant 0 : index
    %1 = vector.load %arg3[%c0_1, %c0_2] : memref<32x16xbf16, #tpu.memory_space<vmem>>, vector<32x16xbf16>
    %c0_3 = arith.constant 0 : index
    %c0_4 = arith.constant 0 : index
    %2 = vector.load %arg4[%c0_3, %c0_4] : memref<32x128xbf16, #tpu.memory_space<vmem>>, vector<32x128xbf16>
    %cst = arith.constant dense<0.000000e+00> : vector<32x128xf32>
    %3 = tpu.matmul %0, %2, %cst {dimension_numbers = #tpu.dot_dimension_numbers<[1], [0], [0], [1], [0, 0, 1, 1], [], []>} : vector<32x32xbf16>, vector<32x128xbf16>, vector<32x128xf32> -> vector<32x128xf32>
    %c0_i32 = arith.constant 0 : i32
    %4 = arith.cmpi eq, %arg0, %c0_i32 : i32
    %5 = arith.extui %4 : i1 to i32
    %c0_i32_5 = arith.constant 0 : i32
    %6 = arith.cmpi ne, %5, %c0_i32_5 : i32
    scf.if %6 {
      %c0_i32_7 = arith.constant 0 : i32
      %10 = arith.cmpi eq, %arg1, %c0_i32_7 : i32
      %11 = arith.extui %10 : i1 to i32
      %c0_i32_8 = arith.constant 0 : i32
      %12 = arith.cmpi ne, %11, %c0_i32_8 : i32
      scf.if %12 {
        %cst_19 = arith.constant 0.000000e+00 : f32
        %24 = vector.broadcast %cst_19 : f32 to vector<16x128xf32>
        %c0_20 = arith.constant 0 : index
        %c0_21 = arith.constant 0 : index
        %25 = vector.load %arg14[%c0_20, %c0_21] : memref<16x128xf32, #tpu.memory_space<vmem>>, vector<16x128xf32>
        tpu.vector_store %arg14[%c0_20, %c0_21], %24 {strides = array<i32>} : memref<16x128xf32, #tpu.memory_space<vmem>>, vector<16x128xf32>,
        %cst_22 = arith.constant 0.000000e+00 : f32
        %26 = vector.broadcast %cst_22 : f32 to vector<32x128xf32>
        %c0_23 = arith.constant 0 : index
        %c0_24 = arith.constant 0 : index
        %27 = vector.load %arg15[%c0_23, %c0_24] : memref<32x128xf32, #tpu.memory_space<vmem>>, vector<32x128xf32>
        tpu.vector_store %arg15[%c0_23, %c0_24], %26 {strides = array<i32>} : memref<32x128xf32, #tpu.memory_space<vmem>>, vector<32x128xf32>,
      } else {
      }
      %13 = arith.truncf %3 : vector<32x128xf32> to vector<32x128xbf16>
      %c0_9 = arith.constant 0 : index
      %c0_10 = arith.constant 0 : index
      %14 = vector.load %arg6[%c0_9, %c0_10] : memref<128x128xbf16, #tpu.memory_space<vmem>>, vector<128x128xbf16>
      %cst_11 = arith.constant dense<0.000000e+00> : vector<32x128xf32>
      %15 = tpu.matmul %13, %14, %cst_11 {dimension_numbers = #tpu.dot_dimension_numbers<[1], [0], [0], [1], [0, 0, 1, 1], [], []>} : vector<32x128xbf16>, vector<128x128xbf16>, vector<32x128xf32> -> vector<32x128xf32>
      %c0_12 = arith.constant 0 : index
      %c0_13 = arith.constant 0 : index
      %16 = vector.load %arg7[%c0_12, %c0_13] : memref<1x128xf32, #tpu.memory_space<vmem>>, vector<1x128xf32>
      %17 = vector.broadcast %16 : vector<1x128xf32> to vector<32x128xf32>
      %18 = arith.addf %15, %17 : vector<32x128xf32>
      %c0_14 = arith.constant 0 : index
      %c0_15 = arith.constant 0 : index
      %19 = vector.load %arg14[%c0_14, %c0_15] : memref<16x128xf32, #tpu.memory_space<vmem>>, vector<16x128xf32>
      %20 = arith.truncf %18 : vector<32x128xf32> to vector<32x128xbf16>
      %cst_16 = arith.constant dense<0.000000e+00> : vector<16x128xf32>
      %21 = tpu.matmul %1, %20, %cst_16 {dimension_numbers = #tpu.dot_dimension_numbers<[0], [0], [1], [1], [0, 1, 1, 1], [], []>} : vector<32x16xbf16>, vector<32x128xbf16>, vector<16x128xf32> -> vector<16x128xf32>
      %22 = arith.addf %19, %21 : vector<16x128xf32>
      %c0_17 = arith.constant 0 : index
      %c0_18 = arith.constant 0 : index
      %23 = vector.load %arg14[%c0_17, %c0_18] : memref<16x128xf32, #tpu.memory_space<vmem>>, vector<16x128xf32>
      tpu.vector_store %arg14[%c0_17, %c0_18], %22 {strides = array<i32>} : memref<16x128xf32, #tpu.memory_space<vmem>>, vector<16x128xf32>,
    } else {
    }
    %c1_i32 = arith.constant 1 : i32
    %7 = arith.cmpi eq, %arg0, %c1_i32 : i32
    %8 = arith.extui %7 : i1 to i32
    %c0_i32_6 = arith.constant 0 : i32
    %9 = arith.cmpi ne, %8, %c0_i32_6 : i32
    scf.if %9 {
      %c0_7 = arith.constant 0 : index
      %c0_8 = arith.constant 0 : index
      %10 = vector.load %arg14[%c0_7, %c0_8] : memref<16x128xf32, #tpu.memory_space<vmem>>, vector<16x128xf32>
      %11 = arith.truncf %10 : vector<16x128xf32> to vector<16x128xbf16>
      %cst_9 = arith.constant dense<0.000000e+00> : vector<32x128xf32>
      %12 = tpu.matmul %1, %11, %cst_9 {dimension_numbers = #tpu.dot_dimension_numbers<[1], [0], [0], [1], [0, 0, 1, 1], [], []>} : vector<32x16xbf16>, vector<16x128xbf16>, vector<32x128xf32> -> vector<32x128xf32>
      %13 = arith.truncf %3 : vector<32x128xf32> to vector<32x128xbf16>
      %c0_10 = arith.constant 0 : index
      %c0_11 = arith.constant 0 : index
      %14 = vector.load %arg8[%c0_10, %c0_11] : memref<128x128xbf16, #tpu.memory_space<vmem>>, vector<128x128xbf16>
      %cst_12 = arith.constant dense<0.000000e+00> : vector<32x128xf32>
      %15 = tpu.matmul %13, %14, %cst_12 {dimension_numbers = #tpu.dot_dimension_numbers<[1], [0], [0], [1], [0, 0, 1, 1], [], []>} : vector<32x128xbf16>, vector<128x128xbf16>, vector<32x128xf32> -> vector<32x128xf32>
      %16 = arith.truncf %12 : vector<32x128xf32> to vector<32x128xbf16>
      %c0_13 = arith.constant 0 : index
      %c0_14 = arith.constant 0 : index
      %17 = vector.load %arg9[%c0_13, %c0_14] : memref<128x128xbf16, #tpu.memory_space<vmem>>, vector<128x128xbf16>
      %cst_15 = arith.constant dense<0.000000e+00> : vector<32x128xf32>
      %18 = tpu.matmul %16, %17, %cst_15 {dimension_numbers = #tpu.dot_dimension_numbers<[1], [0], [0], [1], [0, 0, 1, 1], [], []>} : vector<32x128xbf16>, vector<128x128xbf16>, vector<32x128xf32> -> vector<32x128xf32>
      %19 = arith.addf %15, %18 : vector<32x128xf32>
      %c0_16 = arith.constant 0 : index
      %c0_17 = arith.constant 0 : index
      %20 = vector.load %arg10[%c0_16, %c0_17] : memref<1x128xf32, #tpu.memory_space<vmem>>, vector<1x128xf32>
      %21 = vector.broadcast %20 : vector<1x128xf32> to vector<32x128xf32>
      %22 = arith.addf %19, %21 : vector<32x128xf32>
      %c0_18 = arith.constant 0 : index
      %c0_19 = arith.constant 0 : index
      %23 = vector.load %arg15[%c0_18, %c0_19] : memref<32x128xf32, #tpu.memory_space<vmem>>, vector<32x128xf32>
      %24 = arith.truncf %22 : vector<32x128xf32> to vector<32x128xbf16>
      %cst_20 = arith.constant dense<0.000000e+00> : vector<32x128xf32>
      %25 = tpu.matmul %0, %24, %cst_20 {dimension_numbers = #tpu.dot_dimension_numbers<[0], [0], [1], [1], [0, 1, 1, 1], [], []>} : vector<32x32xbf16>, vector<32x128xbf16>, vector<32x128xf32> -> vector<32x128xf32>
      %26 = arith.addf %23, %25 : vector<32x128xf32>
      %c0_21 = arith.constant 0 : index
      %c0_22 = arith.constant 0 : index
      %27 = vector.load %arg15[%c0_21, %c0_22] : memref<32x128xf32, #tpu.memory_space<vmem>>, vector<32x128xf32>
      tpu.vector_store %arg15[%c0_21, %c0_22], %26 {strides = array<i32>} : memref<32x128xf32, #tpu.memory_space<vmem>>, vector<32x128xf32>,
      %c1_i32_23 = arith.constant 1 : i32
      %28 = arith.cmpi eq, %arg1, %c1_i32_23 : i32
      %29 = arith.extui %28 : i1 to i32
      %c0_i32_24 = arith.constant 0 : i32
      %30 = arith.cmpi ne, %29, %c0_i32_24 : i32
      scf.if %30 {
        %c0_25 = arith.constant 0 : index
        %c0_26 = arith.constant 0 : index
        %31 = vector.load %arg15[%c0_25, %c0_26] : memref<32x128xf32, #tpu.memory_space<vmem>>, vector<32x128xf32>
        %cst_27 = arith.constant 5.000000e-01 : f32
        %32 = vector.broadcast %cst_27 : f32 to vector<32x128xf32>
        %33 = arith.mulf %32, %31 : vector<32x128xf32>
        %c0_28 = arith.constant 0 : index
        %c0_29 = arith.constant 0 : index
        %34 = vector.load %arg5[%c0_28, %c0_29] : memref<32x128xf32, #tpu.memory_space<vmem>>, vector<32x128xf32>
        %cst_30 = arith.constant 5.000000e-01 : f32
        %35 = vector.broadcast %cst_30 : f32 to vector<32x128xf32>
        %36 = arith.mulf %35, %34 : vector<32x128xf32>
        %37 = arith.addf %33, %36 : vector<32x128xf32>
        %38 = arith.truncf %37 : vector<32x128xf32> to vector<32x128xbf16>
        %c0_31 = arith.constant 0 : index
        %c0_32 = arith.constant 0 : index
        %39 = vector.load %arg11[%c0_31, %c0_32] : memref<128x128xbf16, #tpu.memory_space<vmem>>, vector<128x128xbf16>
        %cst_33 = arith.constant dense<0.000000e+00> : vector<32x128xf32>
        %40 = tpu.matmul %38, %39, %cst_33 {dimension_numbers = #tpu.dot_dimension_numbers<[1], [0], [0], [1], [0, 0, 1, 1], [], []>} : vector<32x128xbf16>, vector<128x128xbf16>, vector<32x128xf32> -> vector<32x128xf32>
        %c0_34 = arith.constant 0 : index
        %c0_35 = arith.constant 0 : index
        %41 = vector.load %arg12[%c0_34, %c0_35] : memref<1x128xf32, #tpu.memory_space<vmem>>, vector<1x128xf32>
        %42 = vector.broadcast %41 : vector<1x128xf32> to vector<32x128xf32>
        %43 = arith.addf %40, %42 : vector<32x128xf32>
        %c0_36 = arith.constant 0 : index
        %c0_37 = arith.constant 0 : index
        %44 = vector.load %arg13[%c0_36, %c0_37] : memref<32x128xf32, #tpu.memory_space<vmem>>, vector<32x128xf32>
        tpu.vector_store %arg13[%c0_36, %c0_37], %43 {strides = array<i32>} : memref<32x128xf32, #tpu.memory_space<vmem>>, vector<32x128xf32>,
      } else {
      }
    } else {
    }
    return
  }
  func.func @transform_0(%arg0: i32, %arg1: i32) -> (i32, i32) {
    %c0_i32 = arith.constant 0 : i32
    %c0_i32_0 = arith.constant 0 : i32
    return %arg1, %c0_i32 : i32, i32
  }
  func.func @transform_1(%arg0: i32, %arg1: i32) -> (i32, i32) {
    %c0_i32 = arith.constant 0 : i32
    %c0_i32_0 = arith.constant 0 : i32
    return %arg1, %c0_i32 : i32, i32
  }
  func.func @transform_2(%arg0: i32, %arg1: i32) -> (i32, i32) {
    %c0_i32 = arith.constant 0 : i32
    %c0_i32_0 = arith.constant 0 : i32
    %c0_i32_1 = arith.constant 0 : i32
    return %c0_i32, %c0_i32_0 : i32, i32
  }
  func.func @transform_3(%arg0: i32, %arg1: i32) -> (i32, i32) {
    %c0_i32 = arith.constant 0 : i32
    %c0_i32_0 = arith.constant 0 : i32
    %c0_i32_1 = arith.constant 0 : i32
    return %c0_i32, %c0_i32_0 : i32, i32
  }
  func.func @transform_4(%arg0: i32, %arg1: i32) -> (i32, i32) {
    %c0_i32 = arith.constant 0 : i32
    %c0_i32_0 = arith.constant 0 : i32
    %c0_i32_1 = arith.constant 0 : i32
    return %c0_i32, %c0_i32_0 : i32, i32
  }
  func.func @transform_5(%arg0: i32, %arg1: i32) -> (i32, i32) {
    %c0_i32 = arith.constant 0 : i32
    %c0_i32_0 = arith.constant 0 : i32
    %c0_i32_1 = arith.constant 0 : i32
    return %c0_i32, %c0_i32_0 : i32, i32
  }
  func.func @transform_6(%arg0: i32, %arg1: i32) -> (i32, i32) {
    %c0_i32 = arith.constant 0 : i32
    %c0_i32_0 = arith.constant 0 : i32
    %c0_i32_1 = arith.constant 0 : i32
    return %c0_i32, %c0_i32_0 : i32, i32
  }
  func.func @transform_7(%arg0: i32, %arg1: i32) -> (i32, i32) {
    %c0_i32 = arith.constant 0 : i32
    %c0_i32_0 = arith.constant 0 : i32
    %c0_i32_1 = arith.constant 0 : i32
    return %c0_i32, %c0_i32_0 : i32, i32
  }
  func.func @transform_8(%arg0: i32, %arg1: i32) -> (i32, i32) {
    %c0_i32 = arith.constant 0 : i32
    %c0_i32_0 = arith.constant 0 : i32
    %c0_i32_1 = arith.constant 0 : i32
    return %c0_i32, %c0_i32_0 : i32, i32
  }
  func.func @transform_9(%arg0: i32, %arg1: i32) -> (i32, i32) {
    %c0_i32 = arith.constant 0 : i32
    %c0_i32_0 = arith.constant 0 : i32
    %c0_i32_1 = arith.constant 0 : i32
    return %c0_i32, %c0_i32_0 : i32, i32
  }
  func.func @transform_10(%arg0: i32, %arg1: i32) -> (i32, i32) {
    %c0_i32 = arith.constant 0 : i32
    %c0_i32_0 = arith.constant 0 : i32
    %c0_i32_1 = arith.constant 0 : i32
    return %c0_i32, %c0_i32_0 : i32, i32
  }
  func.func @transform_11(%arg0: i32, %arg1: i32) -> (i32, i32) {
    %c0_i32 = arith.constant 0 : i32
    %c0_i32_0 = arith.constant 0 : i32
    %c0_i32_1 = arith.constant 0 : i32
    return %c0_i32, %c0_i32_0 : i32, i32
  }
}

</mosaic_0001>

<bundles_post_ra>
// kernel: equiv_set_conv.1
= control target key start
LH: loop header
LB: loop body
LE: loop exit
PB: predicated region body
PF: predicated region fallthrough
CT: control target
= control target key end

     0   :  { %16 = vsyncpa [#allocation5], 0  ;;  %s1793_s17 = smov 0   ;;  %s1795_s18 = smov 0   ;;  %s2039_s0 = inlined_call_operand.vmem [shape: bf16[64,32], index: 0, kind: input, shape index: {}]   ;;  %s2040_s1 = inlined_call_operand.vmem [shape: bf16[64,16], index: 1, kind: input, shape index: {}]   ;;  %s2041_s2 = inlined_call_operand.vmem [shape: bf16[32,128], index: 2, kind: input, shape index: {}]   ;;  %s2042_s3 = inlined_call_operand.vmem [shape: f32[32,128], index: 3, kind: input, shape index: {}]   ;;  %s2043_s4 = inlined_call_operand.vmem [shape: bf16[128,128], index: 4, kind: input, shape index: {}]   ;;  %s2044_s5 = inlined_call_operand.vmem [shape: f32[1,128], index: 5, kind: input, shape index: {}]   ;;  %s2045_s6 = inlined_call_operand.vmem [shape: bf16[128,128], index: 6, kind: input, shape index: {}]   ;;  %s2046_s7 = inlined_call_operand.vmem [shape: bf16[128,128], index: 7, kind: input, shape index: {}]   ;;  %s2047_s8 = inlined_call_operand.vmem [shape: f32[1,128], index: 8, kind: input, shape index: {}]   ;;  %s2048_s9 = inlined_call_operand.vmem [shape: bf16[128,128], index: 9, kind: input, shape index: {}]   ;;  %s2049_s10 = inlined_call_operand.vmem [shape: f32[1,128], index: 10, kind: input, shape index: {}]   ;;  %s2050_s11 = inlined_call_operand.hbm [shape: f32[32,128], index: 11, kind: output, shape index: {}]  }
   0x1   :  { %s1797_s19 = smov 0   ;;  %s1799_s20 = smov 0  }
   0x2   :  { %s1801_s21 = smov 0  }
   0x3 LB: > { %s1339_s22 = sadd.s32 4294967295, %s1725_s21   ;;  %s31_s23 = sadd.s32 1, %s1717_s19  ;;  %s1725_s21 = sphi %s1801_s21, %s22_s21   ;;  %s1721_s20 = sphi %s1799_s20, %s2055_s20   ;;  %s1717_s19 = sphi %s1797_s19, %s2054_s19   ;;  %s1713_s18 = sphi %s1795_s18, %s2053_s18   ;;  %s1709_s17 = sphi %s1793_s17, %s2052_s17  }
   0x4   : > { %p32_p0 = scmp.ge.s32.totalorder %s31_s23, 2  ;;  %s34_s24 = sadd.s32 1, %s1721_s20 }
   0x5   : > { %p1342_p1 = scmp.ge.s32.totalorder %s1725_s21, 1  ;;  %p357_p2 = scmp.lt.s32.totalorder %s1725_s21, 5 }
   0x6   : > { %s2057_s23 = smov (%p32_p0, %s31_s23), 0  ;;  %s2059_s24 = smov (!%p32_p0, %s34_s24), %s1721_s20 }
   0x7   : > { %p358_p3 = pnand %p1342_p1, %p357_p2  ;;  %p36_p4 = scmp.ge.s32.totalorder %s2059_s24, 2 }
   0x8   : > { %s1343_s27 = sshll.u32 (!%p358_p3), %s1709_s17, 2  ;;  %p1353_p6 = scmp.ne.s32.totalorder (!%p358_p3), %s1713_s18, 0 }
   0x9   : > { %s2061_s24 = smov (%p36_p4, %s2059_s24), 0  ;;  %361 = sbr.rel (%p358_p3) target bundleno = 1552 (0x610), region = 64 }
   0xa   : > { %p398_p5 = scmp.lt.s32.totalorder (!%p358_p3), %s1343_s27, 7 }
   0xe   : > { %v1623_v0 = vld [vmem:[%s2041_s2 + $0x8] sm:$0xff]   ;;  %v1624_v1 = vld [vmem:[%s2041_s2] sm:$0xff]   ;;  %s2063_s27 = smov (!%p398_p5, %s1343_s27), 7  ;;  %vm444_vm0 = vcmask 261120   ;;  %p1354_p7 = scmp.ne.s32.totalorder (!%p1353_p6), %s1709_s17, 0 }
   0xf   : > { %1459 = vmatprep.subr.bf16.mxu0 %v1623_v0  ;;  %s1344_s30 = sshll.u32 %s2063_s27, 2 }
  0x10   : > { %1460 = vmatpush3.bf16.msra.mxu0 %v1623_v0  ;;  %s401_s14 = scalar_lea.vmem %s2039_s0, %s1344_s30  ;;  %s407_s25 = scalar_lea.vmem %s2040_s1, %s1344_s30 }
  0x11   : > { %1461 = vmatprep.subr.bf16.mxu0 %v1624_v1  ;;  %v1841_v2 = vld [vmem:[%s407_s25] sm:$0xf]  ;;  %v1843_v3 = vld [vmem:[%s407_s25 + $0x4] sm:$0xf]  ;;  %v1845_v4 = vld [vmem:[%s407_s25 + $0x8] sm:$0xf] }
  0x12   : > { %v1847_v5 = vld [vmem:[%s407_s25 + $0xc] sm:$0xf]  ;;  %v1849_v6 = vld [vmem:[%s401_s14] sm:$0xff]  }
  0x13   : > { %v1851_v7 = vld [vmem:[%s401_s14 + $0x8] sm:$0xff]   ;;  %1463 = vmatprep.mubr.msk.bf16.mxu0 %vm444_vm0, %v1849_v6 }
  0x14   : > { %1462 = vmatpush3.bf16.msra.mxu0 %v1624_v1 }
  0x17   : > { %1464 = vmatmul.mubr.msk.bf16.vlgmr.msra.gmra.mxu0 %vm444_vm0, %v1851_v7 }
  0xd7   : > { %v1857_v8 = vpop.f32.mrf.mxu0 }
  0xd9   : > { %v1859_v9 = vpop.f32.mrf.mxu0  ;;  %503 = sbr.rel (%p1353_p6) target bundleno = 672 (0x2a0), region = 68 }
  0xdb   : > { %v1861_v10 = vpop.f32.mrf.mxu0 }
  0xdd   : > { %v1863_v11 = vpop.f32.mrf.mxu0 }
  0xde   : > { %507 = sbr.rel (%p1354_p7) target bundleno = 231 (0xe7), region = 72 }
  0xe3   : > { %v1727_v12 = vmov 0.0  }
  0xe4   : > { %508 = vst [vmem:[#allocation2] sm:$0xff] %v1727_v12  ;;  %509 = vst [vmem:[#allocation2 + $0x8] sm:$0xff] %v1727_v12 }
  0xe5   : > { %510 = vst [vmem:[#allocation3 + $0x8] sm:$0xff] %v1727_v12  ;;  %511 = vst [vmem:[#allocation3 + $0x10] sm:$0xff] %v1727_v12 }
  0xe6   : > { %512 = vst [vmem:[#allocation3] sm:$0xff] %v1727_v12  ;;  %513 = vst [vmem:[#allocation3 + $0x18] sm:$0xff] %v1727_v12 }
  0xe7 PF: > { %v1627_v13 = vld [vmem:[%s2043_s4 + $0x38] sm:$0xff]   ;;  %v514_v14 = vpack.c.bf16 %v1863_v11, %v1859_v9  ;;  %v1364_v15 = vcombine.low %v1841_v2, %v1843_v3  ;;  %v1628_v16 = vld [vmem:[%s2043_s4 + $0x30] sm:$0xff]   ;;  %v1365_v17 = vcombine.low %v1845_v4, %v1847_v5  ;;  %v1629_v18 = vld [vmem:[%s2043_s4 + $0x28] sm:$0xff]   ;;  %v515_v24 = vpack.c.bf16 %v1861_v10, %v1857_v8 }
  0xe8   : > { %1467 = vmatprep.subr.bf16.mxu0 %v1627_v13  ;;  %v1630_v19 = vld [vmem:[%s2043_s4 + $0x20] sm:$0xff]   ;;  %v1631_v20 = vld [vmem:[%s2043_s4 + $0x18] sm:$0xff]   ;;  %v1632_v21 = vld [vmem:[%s2043_s4 + $0x10] sm:$0xff]   ;;  %v1728_v25 = vmov 0.0   ;;  %vm1729_vm1 = vmmov 0  }
  0xe9   : > { %1483 = vmatprep.mubr.bf16.mxu0 %v514_v14  ;;  %1468 = vmatpush3.bf16.msra.mxu0 %v1627_v13  ;;  %v1633_v22 = vld [vmem:[%s2043_s4 + $0x8] sm:$0xff]   ;;  %v1634_v23 = vld [vmem:[%s2043_s4] sm:$0xff]  }
  0xea   : > { %652 = vxpose.xlu0.c.b16.start [1/2] (short) (narrow) %v1364_v15, 16  ;;  %1469 = vmatprep.subr.bf16.mxu0 %v1628_v16  ;;  %v1355_v27 = vld [vmem:[%s2044_s5] ss:$0 sm:$0xff] }
  0xeb   : > { %1487 = vmatprep.subr.bf16.mxu1 %v1728_v25  ;;  %1491 = vmatprep.mubr.msk.bf16.mxu1 %vm1729_vm1, %v1728_v25  ;;  %v636_v38 = vld [vmem:[#allocation2] sm:$0xff]  ;;  %v637_v42 = vld [vmem:[#allocation2 + $0x8] sm:$0xff] }
  0xed   : > { %1470 = vmatpush3.bf16.msra.mxu0 %v1628_v16 }
  0xee   : > { %653 = vxpose.xlu0.c.b16.end [2/2] (short) (narrow) %v1365_v17, 16  ;;  %1471 = vmatprep.subr.bf16.mxu0 %v1629_v18 }
  0xf1   : > { %1472 = vmatpush3.bf16.msra.mxu0 %v1629_v18 }
  0xf2   : > { %1473 = vmatprep.subr.bf16.mxu0 %v1630_v19 }
  0xf5   : > { %1474 = vmatpush3.bf16.msra.mxu0 %v1630_v19 }
  0xf6   : > { %1475 = vmatprep.subr.bf16.mxu0 %v1631_v20 }
  0xf9   : > { %1476 = vmatpush3.bf16.msra.mxu0 %v1631_v20 }
  0xfa   : > { %1477 = vmatprep.subr.bf16.mxu0 %v1632_v21 }
  0xfd   : > { %1478 = vmatpush3.bf16.msra.mxu0 %v1632_v21 }
  0xfe   : > { %1479 = vmatprep.subr.bf16.mxu0 %v1633_v22 }
 0x101   : > { %1480 = vmatpush3.bf16.msra.mxu0 %v1633_v22 }
 0x102   : > { %1481 = vmatprep.subr.bf16.mxu0 %v1634_v23 }
 0x105   : > { %1482 = vmatpush3.bf16.msra.mxu0 %v1634_v23 }
 0x108   : > { %1484 = vmatmul.mubr.bf16.vlgmr.msra.gmra.mxu0 %v515_v24 }
 0x14c   : > { %v660_v37 = vpop.trf.xlu0 }
 0x1c8   : > { %v1485_v26 = vpop.f32.mrf.mxu0 }
 0x1c9   : > { %v630_v30 = vadd.f32 %v1485_v26, %v1355_v27 }
 0x1ca   : > { %v621_v28 = vpop.f32.mrf.mxu0 }
 0x1cb   : > { %v622_v35 = vadd.f32 %v1355_v27, %v621_v28 }
 0x1cc   : > { %v1486_v29 = vpop.f32.mrf.mxu0 }
 0x1cd   : > { %v633_v31 = vadd.f32 %v1486_v29, %v1355_v27 }
 0x1ce   : > { %v624_v32 = vpop.f32.mrf.mxu0 }
 0x1cf   : > { %v625_v33 = vadd.f32 %v1355_v27, %v624_v32  ;;  %v639_v34 = vpack.c.bf16 %v633_v31, %v630_v30 }
 0x1d1   : > { %1488 = vmatpush3.bf16.msra.mxu1 %v639_v34  ;;  %v638_v36 = vpack.c.bf16 %v625_v33, %v622_v35 }
 0x1d2   : > { %1489 = vmatprep.subr.bf16.mxu1 %v1728_v25 }
 0x1d5   : > { %1490 = vmatpush3.bf16.msra.mxu1 %v638_v36 }
 0x1d8   : > { %1492 = vmatmul.mubr.msk.bf16.vlgmr.msra.gmra.mxu1 %vm444_vm0, %v660_v37 }
 0x298   : > { %v705_v39 = vpop.f32.mrf.mxu1 }
 0x299   : > { %v712_v40 = vadd.f32 %v705_v39, %v636_v38 }
 0x29a   : > { %v1493_v41 = vpop.f32.mrf.mxu1 }
 0x29b   : > { %714 = vst [vmem:[#allocation2] sm:$0xff] %v712_v40 }
 0x29c   : > { %v708_v43 = vpop.f32.mrf.mxu1 }
 0x29d   : > { %v713_v44 = vadd.f32 %v708_v43, %v637_v42 }
 0x29e   : > { %v1494_v45 = vpop.f32.mrf.mxu1 }
 0x29f   : > { %715 = vst [vmem:[#allocation2 + $0x8] sm:$0xff] %v713_v44 }
 0x2a0 PF: > { %p1367_p8 = scmp.ne.s32.totalorder %s1713_s18, 1 }
 0x2a1   : > { %p1391_p9 = scmp.ne.s32.totalorder (!%p1367_p8), %s1709_s17, 1 }
 0x2a2   : > { %719 = sbr.rel (%p1367_p8) target bundleno = 1536 (0x600), region = 76 }
 0x2a7   : > { %v720_v46 = vld [vmem:[#allocation2] sm:$0xff]  ;;  %v721_v47 = vld [vmem:[#allocation2 + $0x8] sm:$0xff]  ;;  %v1368_v48 = vcombine.low %v1841_v2, %v1843_v3  ;;  %vm733_vm2 = vcmask 130048   ;;  %1038 = vxpose.xlu0.c.b16.start [1/2] (short) (narrow) %v1849_v6, 32  ;;  %v1635_v50 = vld [vmem:[%s2045_s6 + $0x38] sm:$0xff]   ;;  %v1369_v51 = vcombine.low %v1845_v4, %v1847_v5  ;;  %v789_v2 = vpack.c.bf16 %v1863_v11, %v1859_v9 }
 0x2a8   : > { %v722_v49 = vpack.c.bf16 %v721_v47, %v720_v46  ;;  %v1637_v52 = vld [vmem:[%s2046_s7 + $0x38] sm:$0xff]   ;;  %v1636_v53 = vld [vmem:[%s2045_s6 + $0x30] sm:$0xff]   ;;  %v1641_v55 = vld [vmem:[%s2046_s7 + $0x28] sm:$0xff]   ;;  %v790_v3 = vpack.c.bf16 %v1861_v10, %v1857_v8 }
 0x2a9   : > { %1497 = vmatprep.mubr.msk.bf16.mxu0 %vm733_vm2, %v1368_v48  ;;  %1501 = vmatprep.subr.bf16.mxu1 %v1637_v52  ;;  %v1639_v54 = vld [vmem:[%s2046_s7 + $0x30] sm:$0xff]   ;;  %v1638_v56 = vld [vmem:[%s2045_s6 + $0x28] sm:$0xff]   ;;  %v1643_v57 = vld [vmem:[%s2046_s7 + $0x20] sm:$0xff]  }
 0x2aa   : > { %1495 = vmatprep.subr.bf16.mxu0 %v722_v49  ;;  %1502 = vmatpush3.bf16.msra.mxu1 %v1637_v52  ;;  %v1640_v58 = vld [vmem:[%s2045_s6 + $0x20] sm:$0xff]   ;;  %v1645_v59 = vld [vmem:[%s2046_s7 + $0x18] sm:$0xff]   ;;  %v1647_v61 = vld [vmem:[%s2046_s7 + $0x10] sm:$0xff]  }
 0x2ab   : > { %1496 = vmatpush3.bf16.msra.mxu0 %v722_v49  ;;  %1039 = vxpose.xlu0.c.b16.end [2/2] (short) (narrow) %v1851_v7, 32  ;;  %v1642_v60 = vld [vmem:[%s2045_s6 + $0x18] sm:$0xff]   ;;  %v1644_v62 = vld [vmem:[%s2045_s6 + $0x10] sm:$0xff]   ;;  %v1646_v63 = vld [vmem:[%s2045_s6 + $0x8] sm:$0xff]  }
 0x2ac   : > { %1521 = vmatprep.subr.bf16.mxu0 %v1635_v50  ;;  %1503 = vmatprep.subr.bf16.mxu1 %v1639_v54  ;;  %v1648_v0 = vld [vmem:[%s2045_s6] sm:$0xff]   ;;  %v1649_v1 = vld [vmem:[%s2046_s7 + $0x8] sm:$0xff]   ;;  %v1032_v32 = vld [vmem:[#allocation3] sm:$0xff] }
 0x2ad   : > { %v1650_v4 = vld [vmem:[%s2046_s7] sm:$0xff]   ;;  %v1030_v34 = vld [vmem:[#allocation3 + $0x8] sm:$0xff]  ;;  %v1033_v37 = vld [vmem:[#allocation3 + $0x18] sm:$0xff] }
 0x2ae   : > { %1498 = vmatmul.mubr.msk.bf16.vlgmr.msra.gmra.mxu0 %vm733_vm2, %v1369_v51  ;;  %1504 = vmatpush3.bf16.msra.mxu1 %v1639_v54  ;;  %v1388_v18 = vld [vmem:[%s2047_s8] ss:$0 sm:$0xff] }
 0x2af   : > { %1522 = vmatpush3.bf16.msra.mxu0 %v1635_v50  ;;  %1505 = vmatprep.subr.bf16.mxu1 %v1641_v55  ;;  %v1031_v40 = vld [vmem:[#allocation3 + $0x10] sm:$0xff] }
 0x2b0   : > { %1523 = vmatprep.subr.bf16.mxu0 %v1636_v53  ;;  %1537 = vmatprep.mubr.bf16.mxu0 %v789_v2 }
 0x2b2   : > { %1506 = vmatpush3.bf16.msra.mxu1 %v1641_v55 }
 0x2b3   : > { %1524 = vmatpush3.bf16.msra.mxu0 %v1636_v53  ;;  %1507 = vmatprep.subr.bf16.mxu1 %v1643_v57 }
 0x2b4   : > { %1525 = vmatprep.subr.bf16.mxu0 %v1638_v56 }
 0x2b6   : > { %1508 = vmatpush3.bf16.msra.mxu1 %v1643_v57 }
 0x2b7   : > { %1526 = vmatpush3.bf16.msra.mxu0 %v1638_v56  ;;  %1509 = vmatprep.subr.bf16.mxu1 %v1645_v59 }
 0x2b8   : > { %1527 = vmatprep.subr.bf16.mxu0 %v1640_v58 }
 0x2ba   : > { %1510 = vmatpush3.bf16.msra.mxu1 %v1645_v59 }
 0x2bb   : > { %1528 = vmatpush3.bf16.msra.mxu0 %v1640_v58  ;;  %1511 = vmatprep.subr.bf16.mxu1 %v1647_v61 }
 0x2bc   : > { %1529 = vmatprep.subr.bf16.mxu0 %v1642_v60 }
 0x2be   : > { %1512 = vmatpush3.bf16.msra.mxu1 %v1647_v61 }
 0x2bf   : > { %1530 = vmatpush3.bf16.msra.mxu0 %v1642_v60  ;;  %1513 = vmatprep.subr.bf16.mxu1 %v1649_v1 }
 0x2c0   : > { %1531 = vmatprep.subr.bf16.mxu0 %v1644_v62 }
 0x2c2   : > { %1514 = vmatpush3.bf16.msra.mxu1 %v1649_v1 }
 0x2c3   : > { %1532 = vmatpush3.bf16.msra.mxu0 %v1644_v62  ;;  %1515 = vmatprep.subr.bf16.mxu1 %v1650_v4 }
 0x2c4   : > { %1533 = vmatprep.subr.bf16.mxu0 %v1646_v63 }
 0x2c6   : > { %1516 = vmatpush3.bf16.msra.mxu1 %v1650_v4 }
 0x2c7   : > { %1534 = vmatpush3.bf16.msra.mxu0 %v1646_v63 }
 0x2c8   : > { %1535 = vmatprep.subr.bf16.mxu0 %v1648_v0 }
 0x2cb   : > { %1536 = vmatpush3.bf16.msra.mxu0 %v1648_v0 }
 0x2ce   : > { %1538 = vmatmul.mubr.bf16.vlgmr.msra.gmra.mxu0 %v790_v3 }
 0x309   : > { %v1046_v9 = vpop.trf.xlu0 }
 0x30d   : > { %v1047_v31 = vpop.trf.xlu0 }
 0x36e   : > { %v1499_v5 = vpop.f32.mrf.mxu0 }
 0x370   : > { %v774_v6 = vpop.f32.mrf.mxu0 }
 0x372   : > { %v1500_v7 = vpop.f32.mrf.mxu0 }
 0x373   : > { %v808_v14 = vpack.c.bf16 %v1500_v7, %v1499_v5 }
 0x374   : > { %v777_v12 = vpop.f32.mrf.mxu0 }
 0x375   : > { %v807_v13 = vpack.c.bf16 %v777_v12, %v774_v6 }
 0x377   : > { %1517 = vmatprep.mubr.bf16.mxu1 %v807_v13 }
 0x378   : > { %1518 = vmatmul.mubr.bf16.vlgmr.msra.gmra.mxu1 %v808_v14 }
 0x379   : > { %1545 = vmatprep.mubr.msk.bf16.mxu1 %vm444_vm0, %v1046_v9 }
 0x38e   : > { %v1539_v8 = vpop.f32.mrf.mxu0 }
 0x390   : > { %v1004_v10 = vpop.f32.mrf.mxu0 }
 0x392   : > { %v1540_v15 = vpop.f32.mrf.mxu0 }
 0x394   : > { %v1007_v22 = vpop.f32.mrf.mxu0 }
 0x438   : > { %v1519_v11 = vpop.f32.mrf.mxu1 }
 0x439   : > { %v1013_v17 = vadd.f32 %v1539_v8, %v1519_v11 }
 0x43a   : > { %v907_v16 = vpop.f32.mrf.mxu1 }
 0x43b   : > { %v1005_v20 = vadd.f32 %v1004_v10, %v907_v16  ;;  %v1028_v24 = vadd.f32 %v1388_v18, %v1013_v17 }
 0x43c   : > { %v1520_v19 = vpop.f32.mrf.mxu1 }
 0x43d   : > { %v1016_v21 = vadd.f32 %v1540_v15, %v1520_v19  ;;  %v1026_v27 = vadd.f32 %v1388_v18, %v1005_v20 }
 0x43e   : > { %v910_v23 = vpop.f32.mrf.mxu1 }
 0x43f   : > { %v1029_v25 = vadd.f32 %v1388_v18, %v1016_v21  ;;  %v1008_v26 = vadd.f32 %v1007_v22, %v910_v23 }
 0x441   : > { %v1027_v28 = vadd.f32 %v1388_v18, %v1008_v26  ;;  %v1035_v29 = vpack.c.bf16 %v1029_v25, %v1028_v24 }
 0x443   : > { %1541 = vmatprep.subr.bf16.mxu1 %v1035_v29  ;;  %v1034_v30 = vpack.c.bf16 %v1027_v28, %v1026_v27 }
 0x444   : > { %1542 = vmatpush3.bf16.msra.mxu1 %v1035_v29 }
 0x445   : > { %1543 = vmatprep.subr.bf16.mxu1 %v1034_v30 }
 0x448   : > { %1544 = vmatpush3.bf16.msra.mxu1 %v1034_v30 }
 0x44b   : > { %1546 = vmatmul.mubr.msk.bf16.vlgmr.msra.gmra.mxu1 %vm444_vm0, %v1047_v31 }
 0x50b   : > { %v1547_v33 = vpop.f32.mrf.mxu1 }
 0x50c   : > { %v1111_v35 = vadd.f32 %v1547_v33, %v1032_v32 }
 0x50d   : > { %v1094_v36 = vpop.f32.mrf.mxu1 }
 0x50e   : > { %1115 = vst [vmem:[#allocation3] sm:$0xff] %v1111_v35  ;;  %v1109_v38 = vadd.f32 %v1094_v36, %v1030_v34 }
 0x50f   : > { %v1548_v39 = vpop.f32.mrf.mxu1 }
 0x510   : > { %1113 = vst [vmem:[#allocation3 + $0x8] sm:$0xff] %v1109_v38  ;;  %v1112_v41 = vadd.f32 %v1548_v39, %v1033_v37  ;;  %1120 = sbr.rel (%p1391_p9) target bundleno = 1536 (0x600), region = 80 }
 0x511   : > { %v1097_v42 = vpop.f32.mrf.mxu1 }
 0x512   : > { %1116 = vst [vmem:[#allocation3 + $0x18] sm:$0xff] %v1112_v41  ;;  %v1110_v43 = vadd.f32 %v1097_v42, %v1031_v40 }
 0x514   : > { %1114 = vst [vmem:[#allocation3 + $0x10] sm:$0xff] %v1110_v43 }
 0x515   : > { %v1651_v44 = vld [vmem:[%s2048_s9 + $0x38] sm:$0xff]   ;;  %v1652_v45 = vld [vmem:[%s2048_s9 + $0x30] sm:$0xff]   ;;  %v1653_v46 = vld [vmem:[%s2048_s9 + $0x28] sm:$0xff]  }
 0x516   : > { %1549 = vmatprep.subr.bf16.mxu0 %v1651_v44  ;;  %v1654_v47 = vld [vmem:[%s2048_s9 + $0x20] sm:$0xff]   ;;  %v1130_v53 = vld [vmem:[%s2042_s3 + $0x8] sm:$0xff]  ;;  %v1655_v57 = vld [vmem:[%s2048_s9 + $0x18] sm:$0xff]  }
 0x517   : > { %1550 = vmatpush3.bf16.msra.mxu0 %v1651_v44  ;;  %v1121_v48 = vld [vmem:[#allocation3 + $0x8] sm:$0xff]  ;;  %v1129_v50 = vld [vmem:[%s2042_s3] sm:$0xff]  ;;  %v1134_v55 = vmul.f32 0.5, %v1130_v53  ;;  %v1656_v60 = vld [vmem:[%s2048_s9 + $0x10] sm:$0xff]  }
 0x518   : > { %1551 = vmatprep.subr.bf16.mxu0 %v1652_v45  ;;  %v1125_v51 = vmul.f32 0.5, %v1121_v48  ;;  %v1133_v54 = vmul.f32 0.5, %v1129_v50  ;;  %v1123_v61 = vld [vmem:[#allocation3] sm:$0xff]  ;;  %v1132_v0 = vld [vmem:[%s2042_s3 + $0x18] sm:$0xff]  ;;  %v1657_v1 = vld [vmem:[%s2048_s9 + $0x8] sm:$0xff]  }
 0x519   : > { %v1124_v62 = vld [vmem:[#allocation3 + $0x18] sm:$0xff]  ;;  %v1131_v63 = vld [vmem:[%s2042_s3 + $0x10] sm:$0xff]  ;;  %v1127_v2 = vmul.f32 0.5, %v1123_v61  ;;  %v1136_v5 = vmul.f32 0.5, %v1132_v0  ;;  %v1658_v6 = vld [vmem:[%s2048_s9] sm:$0xff]  }
 0x51a   : > { %v1137_v56 = vadd.f32 %v1133_v54, %v1125_v51  ;;  %v1128_v3 = vmul.f32 0.5, %v1124_v62  ;;  %v1135_v4 = vmul.f32 0.5, %v1131_v63  ;;  %v1392_v14 = vld [vmem:[%s2049_s10] ss:$0 sm:$0xff] }
 0x51b   : > { %1552 = vmatpush3.bf16.msra.mxu0 %v1652_v45  ;;  %v1122_v49 = vld [vmem:[#allocation3 + $0x10] sm:$0xff] }
 0x51c   : > { %1553 = vmatprep.subr.bf16.mxu0 %v1653_v46  ;;  %v1126_v52 = vmul.f32 0.5, %v1122_v49  ;;  %v1139_v7 = vadd.f32 %v1135_v4, %v1127_v2  ;;  %v1140_v12 = vadd.f32 %v1136_v5, %v1128_v3 }
 0x51e   : > { %v1138_v58 = vadd.f32 %v1134_v55, %v1126_v52  ;;  %v1142_v13 = vpack.c.bf16 %v1140_v12, %v1139_v7 }
 0x51f   : > { %1554 = vmatpush3.bf16.msra.mxu0 %v1653_v46 }
 0x520   : > { %1555 = vmatprep.subr.bf16.mxu0 %v1654_v47  ;;  %v1141_v59 = vpack.c.bf16 %v1138_v58, %v1137_v56 }
 0x522   : > { %1565 = vmatprep.mubr.bf16.mxu0 %v1141_v59 }
 0x523   : > { %1556 = vmatpush3.bf16.msra.mxu0 %v1654_v47 }
 0x524   : > { %1557 = vmatprep.subr.bf16.mxu0 %v1655_v57 }
 0x527   : > { %1558 = vmatpush3.bf16.msra.mxu0 %v1655_v57 }
 0x528   : > { %1559 = vmatprep.subr.bf16.mxu0 %v1656_v60 }
 0x52b   : > { %1560 = vmatpush3.bf16.msra.mxu0 %v1656_v60 }
 0x52c   : > { %1561 = vmatprep.subr.bf16.mxu0 %v1657_v1 }
 0x52f   : > { %1562 = vmatpush3.bf16.msra.mxu0 %v1657_v1 }
 0x530   : > { %1563 = vmatprep.subr.bf16.mxu0 %v1658_v6 }
 0x533   : > { %1564 = vmatpush3.bf16.msra.mxu0 %v1658_v6 }
 0x536   : > { %1566 = vmatmul.mubr.bf16.vlgmr.msra.gmra.mxu0 %v1142_v13 }
 0x5f6   : > { %v1567_v9 = vpop.f32.mrf.mxu0 }
 0x5f7   : > { %v1257_v8 = vadd.f32 %v1567_v9, %v1392_v14 }
 0x5f8   : > { %v1248_v10 = vpop.f32.mrf.mxu0 }
 0x5f9   : > { %1265 = vst [vmem:[#allocation4 + $0x10] sm:$0xff] %v1257_v8  ;;  %v1249_v11 = vadd.f32 %v1392_v14, %v1248_v10 }
 0x5fa   : > { %v1568_v15 = vpop.f32.mrf.mxu0 }
 0x5fb   : > { %1263 = vst [vmem:[#allocation4] sm:$0xff] %v1249_v11  ;;  %v1260_v16 = vadd.f32 %v1568_v15, %v1392_v14 }
 0x5fc   : > { %v1251_v17 = vpop.f32.mrf.mxu0 }
 0x5fd   : > { %1266 = vst [vmem:[#allocation4 + $0x18] sm:$0xff] %v1260_v16  ;;  %v1252_v18 = vadd.f32 %v1392_v14, %v1251_v17 }
 0x5ff   : > { %1264 = vst [vmem:[#allocation4 + $0x8] sm:$0xff] %v1252_v18 }
 0x600 PF: > { %p2009_p10 = scmp.eq.s32.totalorder %s1339_s22, 3  ;;  %s1730_s13 = smov [#allocation4]  }
 0x601   : > { %s1273_s14 = sshll.u32 %s1730_s13, 4  ;;  %s1274_s14 = int_to_ptr.vmem [resolvable:$true] %s1273_s14 }
 0x602   : > { %s1659_s15 = scalar_lea.vmem %s1274_s14, 512  ;;  %p1666_p0 = scmp.lt.s32.totalorder %s1274_s14, %s1274_s14 }
 0x603   : > { %p1660_p11 = scmp.ne.s32.totalorder %s1274_s14, %s1659_s15  ;;  %p1667_p1 = scmp.lt.s32.totalorder %s1659_s15, %s1659_s15 }
 0x605   : > { %p1661_p12 = pnand %p1660_p11, %p2009_p10  ;;  %p1668_p2 = por %p1667_p1, %p1666_p0 }
 0x607   : > { %p1662_p13 = pneg %p1661_p12 }
 0x609   : > { %p1669_p3 = pnand %p1668_p2, %p1662_p13 }
 0x60b   : > { %1672 = shalt.err (!%p1669_p3)
}
 0x60c   : > { %s1731_s18 = smov 128   ;;  %s1732_s22 = smov 8  }
 0x60d   : > { %1570 = dma.vmem_to_hbm [thread:$0]  (%p2009_p10), %s1274_s14, 512, %s2050_s11, [#allocation5], %s1731_s18, %s1731_s18, %s1732_s22  }
 0x60e   : > { %1704 = dma.done.wait (%p2009_p10), [#allocation5], 512  }
 0x60f   : > { %1706 = vsyncadd (%p2009_p10), [#allocation5], 4294966784 }
 0x610 PF: > { %s22_s21 = sadd.s32 1, %s1725_s21   ;;  %s2052_s17 = smov %s1717_s19 }
 0x611   : > { %p19_p4 = scmp.ge.s32.totalorder %s22_s21, 6   ;;  %s2053_s18 = smov %s1721_s20 }
 0x612   : > { %s2054_s19 = smov %s2057_s23  ;;  %s2055_s20 = smov %s2061_s24 }
 0x613   :  { %21 = sbr.rel (!%p19_p4) target bundleno = 3 (0x3), region = 110 }
 0x618   :  { %1289 = vsyncpa [#allocation5], 1 }
 0x619   :  { %1291 = vsyncpa [#allocation5 + $0x1], 1 }

</bundles_post_ra>
